<compile_context>
chip_gen: v7x
topology: tpu7x:2x2x1
jax: 0.10.0
libtpu: 0.0.40
codegen_flags: <defaults>
</compile_context>

<pallas_src>
import math

import jax
import jax.numpy as jnp
from jax.experimental import pallas as pl
from jax.experimental.pallas import tpu as pltpu


_SQRT1_2 = 0.7071067811865476
_VMEM_LIMIT = 32 * 1024 * 1024  # safe on v5e/v6e (128 MiB phys) and v7x (64 MiB)


def _gelu_erf(h):
    """Exact (erf-based) GELU matching torch.nn.functional.gelu default.

    erf via Abramowitz & Stegun 7.1.26 (~1.5e-7 max abs err).  Exact divide
    (no approx reciprocal) so the polynomial accuracy is not degraded; the
    exp still lands on the EUP.  Must be called inside a Pallas kernel.
    """
    a1, a2, a3, a4, a5 = (0.254829592, -0.284496736, 1.421413741,
                          -1.453152027, 1.061405429)
    p = 0.3275911
    z = h * _SQRT1_2
    s = jnp.where(z >= 0.0, 1.0, -1.0)
    az = jnp.abs(z)
    t = 1.0 / (1.0 + p * az)
    poly = ((((a5 * t + a4) * t + a3) * t + a2) * t + a1) * t
    erf = s * (1.0 - poly * jnp.exp(-az * az))
    return 0.5 * h * (1.0 + erf)


# ----------------------------------------------------------------------------
# Fully fused forward kernel: conv1x1 + mean-pool (+ query embed) + MLP head.
# grid = (2,)  -> head axis: h==0 translation head, h==1 rotation head.
# ----------------------------------------------------------------------------

def _fused_forward_kernel(src_t_ref, src_rot_ref,
                          wt_ref, bqt_ref, wr_ref, bqr_ref,
                          w1_ref, b1_ref, w2_ref, b2_ref,
                          o_ref, g_ref):
    h = pl.program_id(0)

    # --- branch-specific: 1x1 conv fused with spatial mean pooling ----------
    # (transformer stub; conv bias + query embedding pre-folded into bq_*)
    @pl.when(h == 0)
    def _():
        x = src_t_ref[...]                               # (B, C_in_t, HW) f32
        mean_c = jnp.mean(x, axis=-1)                    # (B, C_in_t)
        g_ref[...] = (jnp.dot(mean_c, wt_ref[...],
                              preferred_element_type=jnp.float32)
                      + bqt_ref[...])                    # (B, D)

    @pl.when(h == 1)
    def _():
        x = src_rot_ref[...]                             # (B, C_in_rot, HW)
        mean_c = jnp.mean(x, axis=-1)
        g_ref[...] = (jnp.dot(mean_c, wr_ref[...],
                              preferred_element_type=jnp.float32)
                      + bqr_ref[...])                    # (B, D)

    # --- shared head body: Linear -> GELU -> Linear (per-head weight blocks)
    g = g_ref[...]                                       # (B, D) f32
    hidden = (jnp.dot(g.astype(w1_ref.dtype), w1_ref[0],
                      preferred_element_type=jnp.float32)
              + b1_ref[0])                               # (B, CH) f32
    hidden = _gelu_erf(hidden)
    out = (jnp.dot(hidden.astype(w2_ref.dtype), w2_ref[0],
                   preferred_element_type=jnp.float32)
           + b2_ref[0])                                  # (B, OUT_PAD) f32
    o_ref[0] = out


def bev_traj_net_forward(params, src_t, src_rot):
    B, C_t, H, W = src_t.shape
    _, C_r, _, _ = src_rot.shape
    HW = H * W
    D = params["proj_t_w"].shape[1]
    CH = params["w1"].shape[-1]
    OUTP = params["w2"].shape[-1]

    # layout no-op: H*W is already contiguous in NCHW
    xt = src_t.reshape(B, C_t, HW)
    xr = src_rot.reshape(B, C_r, HW)

    wbytes = jnp.dtype(params["w1"].dtype).itemsize
    flops = int(B * (C_t + C_r) * HW                       # spatial mean sums
                + 2 * B * (C_t + C_r) * D                  # 1x1 conv contractions
                + 2 * (2 * B * D * CH + 2 * B * CH * OUTP))  # two MLP heads
    transcendentals = int(2 * B * CH)                      # GELU exp per head
    bytes_accessed = int(4 * B * (C_t + C_r) * HW
                         + 4 * ((C_t + C_r) * D + 2 * D)
                         + wbytes * 2 * (D * CH + CH * OUTP)
                         + 4 * 2 * (CH + OUTP)
                         + 4 * 2 * B * OUTP)

    out = pl.pallas_call(
        _fused_forward_kernel,
        out_shape=jax.ShapeDtypeStruct((2, B, OUTP), jnp.float32),
        grid=(2,),
        in_specs=[
            pl.BlockSpec((B, C_t, HW), lambda h: (0, 0, 0)),   # src_t (resident)
            pl.BlockSpec((B, C_r, HW), lambda h: (0, 0, 0)),   # src_rot (resident)
            pl.BlockSpec((C_t, D), lambda h: (0, 0)),          # proj_t weight
            pl.BlockSpec((1, D), lambda h: (0, 0)),            # bias+query (t)
            pl.BlockSpec((C_r, D), lambda h: (0, 0)),          # proj_rot weight
            pl.BlockSpec((1, D), lambda h: (0, 0)),            # bias+query (rot)
            pl.BlockSpec((1, D, CH), lambda h: (h, 0, 0)),     # fc_h weight (per head)
            pl.BlockSpec((1, 1, CH), lambda h: (h, 0, 0)),     # fc_h bias
            pl.BlockSpec((1, CH, OUTP), lambda h: (h, 0, 0)),  # fc_o weight (compact)
            pl.BlockSpec((1, 1, OUTP), lambda h: (h, 0, 0)),   # fc_o bias
        ],
        out_specs=pl.BlockSpec((1, B, OUTP), lambda h: (h, 0, 0)),
        scratch_shapes=[pltpu.VMEM((B, D), jnp.float32)],
        compiler_params=pltpu.CompilerParams(
            dimension_semantics=("parallel",),   # one head per TC on v7x
            vmem_limit_bytes=_VMEM_LIMIT),
        cost_estimate=pl.CostEstimate(
            flops=flops, transcendentals=transcendentals,
            bytes_accessed=bytes_accessed),
    )(xt, xr,
      params["proj_t_w"], params["bq_t"],
      params["proj_rot_w"], params["bq_rot"],
      params["w1"], params["b1"], params["w2"], params["b2"])

    # padded lanes carry zero weights/bias; keep the real outputs (3 / 4)
    pose = jnp.concatenate([out[0, :, :3], out[1, :, :4]], axis=1)  # (B, 7)
    return {"pose": pose}


# ----------------------------------------------------------------------------
# Deterministic parameter init (synthetic; shapes follow the module __init__)
# ----------------------------------------------------------------------------

def _xavier_uniform(key, shape):
    fan_in, fan_out = shape[0], shape[1]
    limit = math.sqrt(6.0 / (fan_in + fan_out))
    return jax.random.uniform(key, shape, jnp.float32, -limit, limit)


def init_params(key, *, c_in_t, c_in_rot, decoder_dim, ch=1024, out_pad=8,
                weight_dtype=jnp.bfloat16):
    keys = jax.random.split(key, 12)
    # input_proj_{t,rot}: Conv2d(C_in, decoder_dim, kernel_size=1), stored as
    # (C_in, C_out) == PyTorch weight (C_out, C_in, 1, 1) transposed.
    proj_t_w = _xavier_uniform(keys[0], (c_in_t, decoder_dim))
    proj_rot_w = _xavier_uniform(keys[1], (c_in_rot, decoder_dim))
    proj_t_b = jnp.zeros((decoder_dim,), jnp.float32)
    proj_rot_b = jnp.zeros((decoder_dim,), jnp.float32)
    # query embeddings: nn.Embedding(num_scenes=1, decoder_dim)
    q_t = jax.random.normal(keys[2], (1, decoder_dim), jnp.float32)
    q_rot = jax.random.normal(keys[3], (1, decoder_dim), jnp.float32)
    # conv bias + query embedding folded ONCE at init -> no runtime glue op
    bq_t = (proj_t_b + q_t[0]).reshape(1, decoder_dim)
    bq_rot = (proj_rot_b + q_rot[0]).reshape(1, decoder_dim)
    # PoseRegressor heads (decoder_dim -> 1024 -> {3,4}), stacked [t, rot];
    # MXU weights in bf16, fc_o compact-padded only to `out_pad` lanes.
    w1 = jnp.stack([_xavier_uniform(keys[4], (decoder_dim, ch)),
                    _xavier_uniform(keys[5], (decoder_dim, ch))]
                   ).astype(weight_dtype)                       # (2, D, CH)
    b1 = jnp.stack([0.01 * jax.random.normal(keys[6], (ch,), jnp.float32),
                    0.01 * jax.random.normal(keys[7], (ch,), jnp.float32)]
                   ).reshape(2, 1, ch)                          # (2, 1, CH) f32
    w2_t = _xavier_uniform(keys[8], (ch, 3))
    w2_r = _xavier_uniform(keys[9], (ch, 4))
    w2 = jnp.zeros((2, ch, out_pad), jnp.float32)
    w2 = w2.at[0, :, :3].set(w2_t).at[1, :, :4].set(w2_r).astype(weight_dtype)
    b2 = jnp.zeros((2, 1, out_pad), jnp.float32)
    b2 = b2.at[0, 0, :3].set(0.01 * jax.random.normal(keys[10], (3,), jnp.float32))
    b2 = b2.at[1, 0, :4].set(0.01 * jax.random.normal(keys[11], (4,), jnp.float32))
    return {
        "proj_t_w": proj_t_w, "bq_t": bq_t,
        "proj_rot_w": proj_rot_w, "bq_rot": bq_rot,
        "w1": w1, "b1": b1, "w2": w2, "b2": b2,
    }


# ----------------------------------------------------------------------------
# Pure-JAX reference (same stubbed transformer) for a tolerance sanity check
# ----------------------------------------------------------------------------

def _reference_forward(params, src_t, src_rot):
    def branch(x, w, bq):
        mean_c = x.mean(axis=(2, 3))                       # (B, C_in)
        return mean_c @ w + bq                             # (B, D)

    def head(g, i, n_out):
        w1 = params["w1"][i].astype(jnp.float32)
        w2 = params["w2"][i].astype(jnp.float32)
        h = jax.nn.gelu(g @ w1 + params["b1"][i][0], approximate=False)
        return (h @ w2 + params["b2"][i][0])[:, :n_out]

    g_t = branch(src_t, params["proj_t_w"], params["bq_t"])
    g_r = branch(src_rot, params["proj_rot_w"], params["bq_rot"])
    return jnp.concatenate([head(g_t, 0, 3), head(g_r, 1, 4)], axis=1)


# ----------------------------------------------------------------------------

if __name__ == "__main__":
    B, H, W = 2, 16, 16
    C_IN_T, C_IN_ROT = 4, 8        # backbone.num_channels[0], [1]
    DECODER_DIM = 32               # transformer_t.d_model

    key = jax.random.PRNGKey(0)
    k_src_t, k_src_rot, k_params = jax.random.split(key, 3)

    # reduced backbone feature maps (backbone itself is stubbed; see TODO)
    src_t = jax.random.normal(k_src_t, (B, C_IN_T, H, W), jnp.float32)
    src_rot = jax.random.normal(k_src_rot, (B, C_IN_ROT, H, W), jnp.float32)

    params = init_params(k_params, c_in_t=C_IN_T, c_in_rot=C_IN_ROT,
                         decoder_dim=DECODER_DIM)

    fwd = jax.jit(bev_traj_net_forward)
    out = fwd(params, src_t, src_rot)
    pose = jax.block_until_ready(out["pose"])

    assert pose.shape == (B, 7), pose.shape
    assert pose.dtype == jnp.float32
    assert bool(jnp.all(jnp.isfinite(pose)))

    ref = _reference_forward(params, src_t, src_rot)
    assert bool(jnp.allclose(pose, ref, atol=5e-2, rtol=5e-2)), (pose, ref)

    print("KERNEL_OK")
</pallas_src>

<mosaic_0001>
module attributes {stable_mosaic.version = 11 : i64} {
  func.func @_fused_forward_kernel(%arg0: i32, %arg1: memref<2x4x256xf32, #tpu.memory_space<vmem>>, %arg2: memref<2x8x256xf32, #tpu.memory_space<vmem>>, %arg3: memref<4x32xf32, #tpu.memory_space<vmem>>, %arg4: memref<1x32xf32, #tpu.memory_space<vmem>>, %arg5: memref<8x32xf32, #tpu.memory_space<vmem>>, %arg6: memref<1x32xf32, #tpu.memory_space<vmem>>, %arg7: memref<1x32x1024xbf16, #tpu.memory_space<vmem>>, %arg8: memref<1x1x1024xf32, #tpu.memory_space<vmem>>, %arg9: memref<1x1024x8xbf16, #tpu.memory_space<vmem>>, %arg10: memref<1x1x8xf32, #tpu.memory_space<vmem>>, %arg11: memref<1x2x8xf32, #tpu.memory_space<vmem>>, %arg12: memref<2x32xf32, #tpu.memory_space<vmem>>) attributes {dimension_semantics = [#tpu.dimension_semantics<parallel>], iteration_bounds = array<i64: 2>, scalar_prefetch = 0 : i64, scratch_operands = 1 : i64, tpu.core_type = #tpu.core_type<tc>, window_params = [{pipeline_mode = #tpu.pipeline_mode<synchronous>, transform_indices = @transform_0, window_bounds = array<i64: 2, 4, 256>}, {pipeline_mode = #tpu.pipeline_mode<synchronous>, transform_indices = @transform_1, window_bounds = array<i64: 2, 8, 256>}, {pipeline_mode = #tpu.pipeline_mode<synchronous>, transform_indices = @transform_2, window_bounds = array<i64: 4, 32>}, {pipeline_mode = #tpu.pipeline_mode<synchronous>, transform_indices = @transform_3, window_bounds = array<i64: 1, 32>}, {pipeline_mode = #tpu.pipeline_mode<synchronous>, transform_indices = @transform_4, window_bounds = array<i64: 8, 32>}, {pipeline_mode = #tpu.pipeline_mode<synchronous>, transform_indices = @transform_5, window_bounds = array<i64: 1, 32>}, {transform_indices = @transform_6, window_bounds = array<i64: 1, 32, 1024>}, {transform_indices = @transform_7, window_bounds = array<i64: 1, 1, 1024>}, {transform_indices = @transform_8, window_bounds = array<i64: 1, 1024, 8>}, {transform_indices = @transform_9, window_bounds = array<i64: 1, 1, 8>}, {transform_indices = @transform_10, window_bounds = array<i64: 1, 2, 8>}]} {
    %c0_i32 = arith.constant 0 : i32
    %0 = arith.cmpi eq, %arg0, %c0_i32 : i32
    %1 = arith.extui %0 : i1 to i32
    %c0_i32_0 = arith.constant 0 : i32
    %2 = arith.cmpi ne, %1, %c0_i32_0 : i32
    scf.if %2 {
      %c0_35 = arith.constant 0 : index
      %c0_36 = arith.constant 0 : index
      %c0_37 = arith.constant 0 : index
      %67 = vector.load %arg1[%c0_35, %c0_36, %c0_37] : memref<2x4x256xf32, #tpu.memory_space<vmem>>, vector<2x4x256xf32>
      %cst_38 = arith.constant dense<0.000000e+00> : vector<2x4xf32>
      %68 = vector.multi_reduction <add>, %67, %cst_38 [2] : vector<2x4x256xf32> to vector<2x4xf32>
      %cst_39 = arith.constant 2.560000e+02 : f32
      %69 = vector.broadcast %cst_39 : f32 to vector<2x4xf32>
      %70 = arith.divf %68, %69 : vector<2x4xf32>
      %c0_40 = arith.constant 0 : index
      %c0_41 = arith.constant 0 : index
      %71 = vector.load %arg3[%c0_40, %c0_41] : memref<4x32xf32, #tpu.memory_space<vmem>>, vector<4x32xf32>
      %cst_42 = arith.constant dense<0.000000e+00> : vector<2x32xf32>
      %72 = tpu.matmul %70, %71, %cst_42 {dimension_numbers = #tpu.dot_dimension_numbers<[1], [0], [0], [1], [0, 0, 1, 1], [], []>} : vector<2x4xf32>, vector<4x32xf32>, vector<2x32xf32> -> vector<2x32xf32>
      %c0_43 = arith.constant 0 : index
      %c0_44 = arith.constant 0 : index
      %73 = vector.load %arg4[%c0_43, %c0_44] : memref<1x32xf32, #tpu.memory_space<vmem>>, vector<1x32xf32>
      %74 = vector.broadcast %73 : vector<1x32xf32> to vector<2x32xf32>
      %75 = arith.addf %72, %74 : vector<2x32xf32>
      %c0_45 = arith.constant 0 : index
      %c0_46 = arith.constant 0 : index
      %76 = vector.load %arg12[%c0_45, %c0_46] : memref<2x32xf32, #tpu.memory_space<vmem>>, vector<2x32xf32>
      tpu.vector_store %arg12[%c0_45, %c0_46], %75 {strides = array<i32>} : memref<2x32xf32, #tpu.memory_space<vmem>>, vector<2x32xf32>,
    } else {
    }
    %c1_i32 = arith.constant 1 : i32
    %3 = arith.cmpi eq, %arg0, %c1_i32 : i32
    %4 = arith.extui %3 : i1 to i32
    %c0_i32_1 = arith.constant 0 : i32
    %5 = arith.cmpi ne, %4, %c0_i32_1 : i32
    scf.if %5 {
      %c0_35 = arith.constant 0 : index
      %c0_36 = arith.constant 0 : index
      %c0_37 = arith.constant 0 : index
      %67 = vector.load %arg2[%c0_35, %c0_36, %c0_37] : memref<2x8x256xf32, #tpu.memory_space<vmem>>, vector<2x8x256xf32>
      %cst_38 = arith.constant dense<0.000000e+00> : vector<2x8xf32>
      %68 = vector.multi_reduction <add>, %67, %cst_38 [2] : vector<2x8x256xf32> to vector<2x8xf32>
      %cst_39 = arith.constant 2.560000e+02 : f32
      %69 = vector.broadcast %cst_39 : f32 to vector<2x8xf32>
      %70 = arith.divf %68, %69 : vector<2x8xf32>
      %c0_40 = arith.constant 0 : index
      %c0_41 = arith.constant 0 : index
      %71 = vector.load %arg5[%c0_40, %c0_41] : memref<8x32xf32, #tpu.memory_space<vmem>>, vector<8x32xf32>
      %cst_42 = arith.constant dense<0.000000e+00> : vector<2x32xf32>
      %72 = tpu.matmul %70, %71, %cst_42 {dimension_numbers = #tpu.dot_dimension_numbers<[1], [0], [0], [1], [0, 0, 1, 1], [], []>} : vector<2x8xf32>, vector<8x32xf32>, vector<2x32xf32> -> vector<2x32xf32>
      %c0_43 = arith.constant 0 : index
      %c0_44 = arith.constant 0 : index
      %73 = vector.load %arg6[%c0_43, %c0_44] : memref<1x32xf32, #tpu.memory_space<vmem>>, vector<1x32xf32>
      %74 = vector.broadcast %73 : vector<1x32xf32> to vector<2x32xf32>
      %75 = arith.addf %72, %74 : vector<2x32xf32>
      %c0_45 = arith.constant 0 : index
      %c0_46 = arith.constant 0 : index
      %76 = vector.load %arg12[%c0_45, %c0_46] : memref<2x32xf32, #tpu.memory_space<vmem>>, vector<2x32xf32>
      tpu.vector_store %arg12[%c0_45, %c0_46], %75 {strides = array<i32>} : memref<2x32xf32, #tpu.memory_space<vmem>>, vector<2x32xf32>,
    } else {
    }
    %c0 = arith.constant 0 : index
    %c0_2 = arith.constant 0 : index
    %6 = vector.load %arg12[%c0, %c0_2] : memref<2x32xf32, #tpu.memory_space<vmem>>, vector<2x32xf32>
    %7 = arith.truncf %6 : vector<2x32xf32> to vector<2x32xbf16>
    %c0_3 = arith.constant 0 : index
    %c0_4 = arith.constant 0 : index
    %c0_5 = arith.constant 0 : index
    %8 = vector.load %arg7[%c0_3, %c0_4, %c0_5] : memref<1x32x1024xbf16, #tpu.memory_space<vmem>>, vector<1x32x1024xbf16>
    %9 = vector.shape_cast %8 : vector<1x32x1024xbf16> to vector<32x1024xbf16>
    %cst = arith.constant dense<0.000000e+00> : vector<2x1024xf32>
    %10 = tpu.matmul %7, %9, %cst {dimension_numbers = #tpu.dot_dimension_numbers<[1], [0], [0], [1], [0, 0, 1, 1], [], []>} : vector<2x32xbf16>, vector<32x1024xbf16>, vector<2x1024xf32> -> vector<2x1024xf32>
    %c0_6 = arith.constant 0 : index
    %c0_7 = arith.constant 0 : index
    %c0_8 = arith.constant 0 : index
    %11 = vector.load %arg8[%c0_6, %c0_7, %c0_8] : memref<1x1x1024xf32, #tpu.memory_space<vmem>>, vector<1x1x1024xf32>
    %12 = vector.shape_cast %11 : vector<1x1x1024xf32> to vector<1x1024xf32>
    %13 = vector.broadcast %12 : vector<1x1024xf32> to vector<2x1024xf32>
    %14 = arith.addf %10, %13 : vector<2x1024xf32>
    %cst_9 = arith.constant 0.707106769 : f32
    %15 = vector.broadcast %cst_9 : f32 to vector<2x1024xf32>
    %16 = arith.mulf %14, %15 : vector<2x1024xf32>
    %cst_10 = arith.constant 0.000000e+00 : f32
    %17 = vector.broadcast %cst_10 : f32 to vector<2x1024xf32>
    %18 = arith.cmpf oge, %16, %17 : vector<2x1024xf32>
    %cst_11 = arith.constant 1.000000e+00 : f32
    %cst_12 = arith.constant -1.000000e+00 : f32
    %19 = vector.broadcast %cst_11 : f32 to vector<2x1024xf32>
    %20 = vector.broadcast %cst_12 : f32 to vector<2x1024xf32>
    %21 = arith.select %18, %19, %20 : vector<2x1024xi1>, vector<2x1024xf32>
    %22 = math.absf %16 : vector<2x1024xf32>
    %cst_13 = arith.constant 0.327591091 : f32
    %23 = vector.broadcast %cst_13 : f32 to vector<2x1024xf32>
    %24 = arith.mulf %23, %22 : vector<2x1024xf32>
    %cst_14 = arith.constant 1.000000e+00 : f32
    %25 = vector.broadcast %cst_14 : f32 to vector<2x1024xf32>
    %26 = arith.addf %25, %24 : vector<2x1024xf32>
    %cst_15 = arith.constant 1.000000e+00 : f32
    %27 = vector.broadcast %cst_15 : f32 to vector<2x1024xf32>
    %28 = arith.divf %27, %26 : vector<2x1024xf32>
    %cst_16 = arith.constant 1.06140542 : f32
    %29 = vector.broadcast %cst_16 : f32 to vector<2x1024xf32>
    %30 = arith.mulf %29, %28 : vector<2x1024xf32>
    %cst_17 = arith.constant -1.45315206 : f32
    %31 = vector.broadcast %cst_17 : f32 to vector<2x1024xf32>
    %32 = arith.addf %30, %31 : vector<2x1024xf32>
    %33 = arith.mulf %32, %28 : vector<2x1024xf32>
    %cst_18 = arith.constant 1.42141378 : f32
    %34 = vector.broadcast %cst_18 : f32 to vector<2x1024xf32>
    %35 = arith.addf %33, %34 : vector<2x1024xf32>
    %36 = arith.mulf %35, %28 : vector<2x1024xf32>
    %cst_19 = arith.constant -0.284496725 : f32
    %37 = vector.broadcast %cst_19 : f32 to vector<2x1024xf32>
    %38 = arith.addf %36, %37 : vector<2x1024xf32>
    %39 = arith.mulf %38, %28 : vector<2x1024xf32>
    %cst_20 = arith.constant 0.254829586 : f32
    %40 = vector.broadcast %cst_20 : f32 to vector<2x1024xf32>
    %41 = arith.addf %39, %40 : vector<2x1024xf32>
    %42 = arith.mulf %41, %28 : vector<2x1024xf32>
    %cst_21 = arith.constant 0.000000e+00 : f32
    %43 = vector.broadcast %cst_21 : f32 to vector<2x1024xf32>
    %44 = arith.subf %43, %22 : vector<2x1024xf32>
    %45 = arith.mulf %44, %22 : vector<2x1024xf32>
    %46 = math.exp %45 : vector<2x1024xf32>
    %47 = arith.mulf %42, %46 : vector<2x1024xf32>
    %cst_22 = arith.constant 1.000000e+00 : f32
    %48 = vector.broadcast %cst_22 : f32 to vector<2x1024xf32>
    %49 = arith.subf %48, %47 : vector<2x1024xf32>
    %50 = arith.mulf %21, %49 : vector<2x1024xf32>
    %cst_23 = arith.constant 5.000000e-01 : f32
    %51 = vector.broadcast %cst_23 : f32 to vector<2x1024xf32>
    %52 = arith.mulf %51, %14 : vector<2x1024xf32>
    %cst_24 = arith.constant 1.000000e+00 : f32
    %53 = vector.broadcast %cst_24 : f32 to vector<2x1024xf32>
    %54 = arith.addf %53, %50 : vector<2x1024xf32>
    %55 = arith.mulf %52, %54 : vector<2x1024xf32>
    %56 = arith.truncf %55 : vector<2x1024xf32> to vector<2x1024xbf16>
    %c0_25 = arith.constant 0 : index
    %c0_26 = arith.constant 0 : index
    %c0_27 = arith.constant 0 : index
    %57 = vector.load %arg9[%c0_25, %c0_26, %c0_27] : memref<1x1024x8xbf16, #tpu.memory_space<vmem>>, vector<1x1024x8xbf16>
    %58 = vector.shape_cast %57 : vector<1x1024x8xbf16> to vector<1024x8xbf16>
    %cst_28 = arith.constant dense<0.000000e+00> : vector<2x8xf32>
    %59 = tpu.matmul %56, %58, %cst_28 {dimension_numbers = #tpu.dot_dimension_numbers<[1], [0], [0], [1], [0, 0, 1, 1], [], []>} : vector<2x1024xbf16>, vector<1024x8xbf16>, vector<2x8xf32> -> vector<2x8xf32>
    %c0_29 = arith.constant 0 : index
    %c0_30 = arith.constant 0 : index
    %c0_31 = arith.constant 0 : index
    %60 = vector.load %arg10[%c0_29, %c0_30, %c0_31] : memref<1x1x8xf32, #tpu.memory_space<vmem>>, vector<1x1x8xf32>
    %61 = vector.shape_cast %60 : vector<1x1x8xf32> to vector<1x8xf32>
    %62 = vector.broadcast %61 : vector<1x8xf32> to vector<2x8xf32>
    %63 = arith.addf %59, %62 : vector<2x8xf32>
    %c0_32 = arith.constant 0 : index
    %c0_33 = arith.constant 0 : index
    %c0_34 = arith.constant 0 : index
    %64 = vector.load %arg11[%c0_32, %c0_33, %c0_34] : memref<1x2x8xf32, #tpu.memory_space<vmem>>, vector<1x2x8xf32>
    %65 = vector.shape_cast %64 : vector<1x2x8xf32> to vector<2x8xf32>
    %66 = vector.shape_cast %63 : vector<2x8xf32> to vector<1x2x8xf32>
    tpu.vector_store %arg11[%c0_32, %c0_33, %c0_34], %66 {strides = array<i32>} : memref<1x2x8xf32, #tpu.memory_space<vmem>>, vector<1x2x8xf32>,
    return
  }
  func.func @transform_0(%arg0: i32) -> (i32, i32, i32) {
    %c0_i32 = arith.constant 0 : i32
    %c0_i32_0 = arith.constant 0 : i32
    %c0_i32_1 = arith.constant 0 : i32
    %c0_i32_2 = arith.constant 0 : i32
    return %c0_i32, %c0_i32_0, %c0_i32_1 : i32, i32, i32
  }
  func.func @transform_1(%arg0: i32) -> (i32, i32, i32) {
    %c0_i32 = arith.constant 0 : i32
    %c0_i32_0 = arith.constant 0 : i32
    %c0_i32_1 = arith.constant 0 : i32
    %c0_i32_2 = arith.constant 0 : i32
    return %c0_i32, %c0_i32_0, %c0_i32_1 : i32, i32, i32
  }
  func.func @transform_2(%arg0: i32) -> (i32, i32) {
    %c0_i32 = arith.constant 0 : i32
    %c0_i32_0 = arith.constant 0 : i32
    %c0_i32_1 = arith.constant 0 : i32
    return %c0_i32, %c0_i32_0 : i32, i32
  }
  func.func @transform_3(%arg0: i32) -> (i32, i32) {
    %c0_i32 = arith.constant 0 : i32
    %c0_i32_0 = arith.constant 0 : i32
    %c0_i32_1 = arith.constant 0 : i32
    return %c0_i32, %c0_i32_0 : i32, i32
  }
  func.func @transform_4(%arg0: i32) -> (i32, i32) {
    %c0_i32 = arith.constant 0 : i32
    %c0_i32_0 = arith.constant 0 : i32
    %c0_i32_1 = arith.constant 0 : i32
    return %c0_i32, %c0_i32_0 : i32, i32
  }
  func.func @transform_5(%arg0: i32) -> (i32, i32) {
    %c0_i32 = arith.constant 0 : i32
    %c0_i32_0 = arith.constant 0 : i32
    %c0_i32_1 = arith.constant 0 : i32
    return %c0_i32, %c0_i32_0 : i32, i32
  }
  func.func @transform_6(%arg0: i32) -> (i32, i32, i32) {
    %c0_i32 = arith.constant 0 : i32
    %c0_i32_0 = arith.constant 0 : i32
    %c0_i32_1 = arith.constant 0 : i32
    return %arg0, %c0_i32, %c0_i32_0 : i32, i32, i32
  }
  func.func @transform_7(%arg0: i32) -> (i32, i32, i32) {
    %c0_i32 = arith.constant 0 : i32
    %c0_i32_0 = arith.constant 0 : i32
    %c0_i32_1 = arith.constant 0 : i32
    return %arg0, %c0_i32, %c0_i32_0 : i32, i32, i32
  }
  func.func @transform_8(%arg0: i32) -> (i32, i32, i32) {
    %c0_i32 = arith.constant 0 : i32
    %c0_i32_0 = arith.constant 0 : i32
    %c0_i32_1 = arith.constant 0 : i32
    return %arg0, %c0_i32, %c0_i32_0 : i32, i32, i32
  }
  func.func @transform_9(%arg0: i32) -> (i32, i32, i32) {
    %c0_i32 = arith.constant 0 : i32
    %c0_i32_0 = arith.constant 0 : i32
    %c0_i32_1 = arith.constant 0 : i32
    return %arg0, %c0_i32, %c0_i32_0 : i32, i32, i32
  }
  func.func @transform_10(%arg0: i32) -> (i32, i32, i32) {
    %c0_i32 = arith.constant 0 : i32
    %c0_i32_0 = arith.constant 0 : i32
    %c0_i32_1 = arith.constant 0 : i32
    return %arg0, %c0_i32, %c0_i32_0 : i32, i32, i32
  }
}

</mosaic_0001>

<bundles_post_ra>
// kernel: bev_traj_net_forward.1
= control target key start
LH: loop header
LB: loop body
LE: loop exit
PB: predicated region body
PF: predicated region fallthrough
CT: control target
= control target key end

     0   :  { %s2339_s13 = smov 0   ;;  %s2699_s0 = inlined_call_operand.vmem [shape: f32[2,4,256], index: 0, kind: input, shape index: {}]   ;;  %s2700_s1 = inlined_call_operand.vmem [shape: f32[2,8,256], index: 1, kind: input, shape index: {}]   ;;  %s2701_s2 = inlined_call_operand.vmem [shape: f32[4,32], index: 2, kind: input, shape index: {}]   ;;  %s2702_s3 = inlined_call_operand.vmem [shape: f32[1,32], index: 3, kind: input, shape index: {}]   ;;  %s2703_s4 = inlined_call_operand.vmem [shape: f32[8,32], index: 4, kind: input, shape index: {}]   ;;  %s2704_s5 = inlined_call_operand.vmem [shape: f32[1,32], index: 5, kind: input, shape index: {}]   ;;  %s2705_s6 = inlined_call_operand.vmem [shape: bf16[2,32,1024], index: 6, kind: input, shape index: {}]   ;;  %s2706_s7 = inlined_call_operand.vmem [shape: f32[2,1,1024], index: 7, kind: input, shape index: {}]   ;;  %s2707_s8 = inlined_call_operand.vmem [shape: bf16[2,1024,8], index: 8, kind: input, shape index: {}]   ;;  %s2708_s9 = inlined_call_operand.vmem [shape: f32[2,1,8], index: 9, kind: input, shape index: {}]   ;;  %s2709_s10 = inlined_call_operand.vmem [shape: f32[2,2,8], index: 10, kind: output, shape index: {}]  }
   0x1 LB: > { %s2345_s14 = sadd.s32 4294967295, %s2276_s13   ;;  %p1953_p0 = scmp.ge.s32.totalorder %s2276_s13, 1  ;;  %s2276_s13 = sphi %s2339_s13, %s20_s13  }
   0x2   : > { %p339_p1 = scmp.lt.s32.totalorder %s2276_s13, 3 }
   0x4   : > { %p340_p2 = pnand %p1953_p0, %p339_p1 }
   0x5   : > { %p388_p3 = scmp.lt.s32.totalorder (!%p340_p2), %s2345_s14, 1  ;;  %p1960_p4 = scmp.ne.s32.totalorder (!%p340_p2), %s2345_s14, 0 }
   0x6   : > { %343 = sbr.rel (%p340_p2) target bundleno = 1286 (0x506), region = 60 }
   0xd   : > { %s2351_s15 = scalar_select %p388_p3, %s2345_s14, 1 }
   0xe   : > { %413 = sbr.rel (%p1960_p4) target bundleno = 386 (0x182), region = 64  ;;  %v414_v0 = vld [vmem:[%s2699_s0] sm:$0xff] (!%p1960_p4)  ;;  %vm422_vm0 = vcmask (!%p1960_p4), 1043456   ;;  %v415_v1 = vld [vmem:[%s2699_s0 + $0x8] sm:$0xff] (!%p1960_p4)  ;;  %v2278_v11 = vmov (!%p1960_p4), 0.0   ;;  %vm2279_vm1 = vmmov (!%p1960_p4), 0   ;;  %v446_v12 = vlaneseq (!%p1960_p4) }
   0xf   : > { %s2054_s16 = sshll.u32 %s2351_s15, 7  ;;  %s1956_s17 = sshll.u32 %s2351_s15, 3  ;;  %v418_v2 = vcombine.high (!%p1960_p4), %v414_v0, %v414_v0  ;;  %v423_v3 = vsel (!%p1960_p4), %vm422_vm0, %v414_v0, 0.0  ;;  %v419_v4 = vcombine.high (!%p1960_p4), %v415_v1, %v415_v1  ;;  %v428_v6 = vsel (!%p1960_p4), %vm422_vm0, %v415_v1, 0.0  ;;  %v436_v10 = vld [vmem:[%s2701_s2] sm:$0xf] (!%p1960_p4)  ;;  %2148 = vmatprep.subr.mxu0 (!%p1960_p4), %v2278_v11  ;;  %2150 = vmatprep.mubr.msk.f32.mxu0 (!%p1960_p4), %vm2279_vm1, %v2278_v11 }
  0x10   : > { %s2358_s20 = scalar_lea.vmem %s2705_s6, %s2054_s16  ;;  %s2363_s23 = scalar_lea.vmem %s2706_s7, %s1956_s17  ;;  %2149 = vmatpush3.msk.msra.mxu0 (!%p1960_p4), %vm422_vm0, %v436_v10  ;;  %v447_v13 = vand.u32 (!%p1960_p4), 127, %v446_v12  ;;  %v449_v14 = vshrl.u32 (!%p1960_p4), %v446_v12, 7  ;;  %vm456_vm2 = vcmask (!%p1960_p4), 1041409   ;;  %vm458_vm3 = vcmask (!%p1960_p4), 31744   ;;  %v1961_v23 = vld [vmem:[%s2702_s3] ss:$0 sm:$0xff] (!%p1960_p4) }
  0x11   : > { %s2055_s24 = sshll.u32 %s2351_s15, 9  ;;  %s404_s27 = scalar_lea.vmem %s2708_s9, %s2351_s15  ;;  %v424_v5 = vsel (!%p1960_p4), %vm422_vm0, %v418_v2, 0.0  ;;  %v429_v7 = vsel (!%p1960_p4), %vm422_vm0, %v419_v4, 0.0  ;;  %vm534_vm4 = vcmask (!%p1960_p4), 254976  }
  0x12   : > { %s2373_s30 = scalar_lea.vmem %s2707_s8, %s2055_s24  ;;  %s1959_s11 = sshll.u32 %s2351_s15, 1  ;;  %v425_v8 = vadd.f32 (!%p1960_p4), %v424_v5, %v423_v3  ;;  %v430_v9 = vadd.f32 (!%p1960_p4), %v429_v7, %v428_v6  ;;  %v450_v16 = vsub.s32 (!%p1960_p4), %v447_v13, %v449_v14 }
  0x13   : > { %s2379_s16 = scalar_lea.vmem %s2709_s10, %s1959_s11 }
  0x14   : > { %426 = vadd.xlane.f32.xlu0 (!%p1960_p4), %v425_v8 }
  0x18   : > { %431 = vadd.xlane.f32.xlu0 %v430_v9 }
  0xa1   : > { %v427_v15 = vpop.xlane.xlu0 %426 }
  0xa2   : > { %v434_v17 = vmul.f32 0.00390625, %v427_v15 }
  0xa4   : > { %v451_v20 = vrot.slane %v434_v17, %v450_v16 }
  0xa5   : > { %v432_v18 = vpop.xlane.xlu0 %431 }
  0xa6   : > { %v435_v19 = vmul.f32 0.00390625, %v432_v18 }
  0xa8   : > { %v455_v21 = vrot.slane %v435_v19, %v450_v16 }
  0xaa   : > { %v457_v22 = vsel %vm456_vm2, %v455_v21, %v451_v20 }
  0xab   : > { %2151 = vmatmul.mubr.msk.f32.vlgmr.msra.gmra.mrb[0].mxu0 %vm458_vm3, %v457_v22 }
 0x17e   : > { %v530_v24 = vpop.f32.mrb[0].mxu0 }
 0x17f   : > { %v531_v25 = vadd.f32 %v1961_v23, %v530_v24  ;;  %v2152_v26 = vpop.f32.mrb[1].mxu0 }
 0x181   : > { %535 = vst.msk [vmem:[#allocation2] sm:$0x3] %vm534_vm4, %v531_v25 }
 0x182 PF: > { %p1964_p5 = scmp.ne.s32.totalorder %s2345_s14, 1 }
 0x183   : > { %v540_v27 = vld [vmem:[%s2700_s1] sm:$0xff] (!%p1964_p5)  ;;  %v541_v28 = vld [vmem:[%s2700_s1 + $0x8] sm:$0xff] (!%p1964_p5)  ;;  %v542_v29 = vld [vmem:[%s2700_s1 + $0x10] sm:$0xff] (!%p1964_p5)  ;;  %v2280_v34 = vmov (!%p1964_p5), 0.0   ;;  %vm2281_vm5 = vmmov (!%p1964_p5), 0   ;;  %v563_v35 = vlaneseq (!%p1964_p5)  ;;  %vm573_vm6 = vcmask (!%p1964_p5), 1041409  }
 0x184   : > { %539 = sbr.rel (%p1964_p5) target bundleno = 756 (0x2f4), region = 68  ;;  %v544_v30 = vadd.f32 (!%p1964_p5), %v541_v28, %v540_v27  ;;  %v543_v31 = vld [vmem:[%s2700_s1 + $0x18] sm:$0xff] (!%p1964_p5)  ;;  %v553_v33 = vld [vmem:[%s2703_s4] sm:$0xff] (!%p1964_p5)  ;;  %2153 = vmatprep.subr.mxu0 (!%p1964_p5), %v2280_v34  ;;  %2155 = vmatprep.mubr.msk.f32.mxu0 (!%p1964_p5), %vm2281_vm5, %v2280_v34  ;;  %vm575_vm7 = vcmask (!%p1964_p5), 64512   ;;  %vm648_vm8 = vcmask (!%p1964_p5), 254976  }
 0x185   : > { %v547_v32 = vadd.f32 (!%p1964_p5), %v543_v31, %v542_v29  ;;  %2154 = vmatpush3.msra.mxu0 (!%p1964_p5), %v553_v33  ;;  %v564_v36 = vand.u32 (!%p1964_p5), 127, %v563_v35  ;;  %v566_v37 = vshrl.u32 (!%p1964_p5), %v563_v35, 7  ;;  %v1965_v46 = vld [vmem:[%s2704_s5] ss:$0 sm:$0xff] (!%p1964_p5) }
 0x186   : > { %545 = vadd.xlane.f32.xlu0 (!%p1964_p5), %v544_v30 }
 0x187   : > { %v567_v39 = vsub.s32 (!%p1964_p5), %v564_v36, %v566_v37 }
 0x18a   : > { %548 = vadd.xlane.f32.xlu0 (!%p1964_p5), %v547_v32 }
 0x213   : > { %v546_v38 = vpop.xlane.xlu0 %545 }
 0x214   : > { %v551_v40 = vmul.f32 0.00390625, %v546_v38 }
 0x216   : > { %v568_v43 = vrot.slane %v551_v40, %v567_v39 }
 0x217   : > { %v549_v41 = vpop.xlane.xlu0 %548 }
 0x218   : > { %v552_v42 = vmul.f32 0.00390625, %v549_v41 }
 0x21a   : > { %v572_v44 = vrot.slane %v552_v42, %v567_v39 }
 0x21c   : > { %v574_v45 = vsel %vm573_vm6, %v572_v44, %v568_v43 }
 0x21d   : > { %2156 = vmatmul.mubr.msk.f32.vlgmr.msra.gmra.mrb[0].mxu0 %vm575_vm7, %v574_v45 }
 0x2f0   : > { %v644_v47 = vpop.f32.mrb[0].mxu0 }
 0x2f1   : > { %v645_v48 = vadd.f32 %v1965_v46, %v644_v47  ;;  %v2157_v49 = vpop.f32.mrb[1].mxu0 }
 0x2f3   : > { %649 = vst.msk [vmem:[#allocation2] sm:$0x3] %vm648_vm8, %v645_v48 }
 0x2f4 PF: > { %v652_v50 = vld [vmem:[%s2358_s20] sm:$0xff]  ;;  %v653_v52 = vld [vmem:[%s2358_s20 + $0x8] sm:$0xff]  ;;  %v2282_v58 = vmov 0   ;;  %v654_v1 = vld [vmem:[%s2358_s20 + $0x10] sm:$0xff]  ;;  %vm790_vm9 = vcmask 261120   ;;  %vm1861_vm2 = vcmask 58368  }
 0x2f5   : > { %v656_v51 = vld [vmem:[%s2358_s20 + $0x20] sm:$0xff]  ;;  %v657_v54 = vld [vmem:[%s2358_s20 + $0x28] sm:$0xff]  ;;  %826 = vmatprep.mubr.bf16.mxu0 %v2282_v58  ;;  %867 = vmatprep.mubr.bf16.mxu1 %v2282_v58  ;;  %v658_v2 = vld [vmem:[%s2358_s20 + $0x30] sm:$0xff] }
 0x2f6   : > { %v1968_v53 = vcombine.high %v652_v50, %v656_v51  ;;  %v1967_v55 = vcombine.low %v652_v50, %v656_v51  ;;  %v660_v56 = vld [vmem:[%s2358_s20 + $0x40] sm:$0xff]  ;;  %v1970_v59 = vcombine.high %v653_v52, %v657_v54  ;;  %v1969_v60 = vcombine.low %v653_v52, %v657_v54  ;;  %v661_v62 = vld [vmem:[%s2358_s20 + $0x48] sm:$0xff]  ;;  %v655_v3 = vld [vmem:[%s2358_s20 + $0x18] sm:$0xff] }
 0x2f7   : > { %v664_v57 = vld [vmem:[%s2358_s20 + $0x60] sm:$0xff]  ;;  %v665_v63 = vld [vmem:[%s2358_s20 + $0x68] sm:$0xff]  ;;  %v659_v6 = vld [vmem:[%s2358_s20 + $0x38] sm:$0xff]  ;;  %v1972_v9 = vcombine.high %v654_v1, %v658_v2  ;;  %v1971_v15 = vcombine.low %v654_v1, %v658_v2 }
 0x2f8   : > { %v1976_v61 = vcombine.high %v660_v56, %v664_v57  ;;  %794 = vmatprep.subr.bf16.mxu0 %v1968_v53  ;;  %v1978_v0 = vcombine.high %v661_v62, %v665_v63  ;;  %835 = vmatprep.subr.bf16.mxu1 %v1970_v59  ;;  %v1975_v4 = vcombine.low %v660_v56, %v664_v57  ;;  %v662_v7 = vld [vmem:[%s2358_s20 + $0x50] sm:$0xff]  ;;  %v663_v11 = vld [vmem:[%s2358_s20 + $0x58] sm:$0xff]  ;;  %v2174_v21 = vld [vmem:[%s2373_s30 + $0x40] sm:$0xff]  }
 0x2f9   : > { %795 = vmatpush1.bf16.msra.mxu0 %v1967_v55  ;;  %836 = vmatpush1.bf16.msra.mxu1 %v1969_v60  ;;  %v1977_v8 = vcombine.low %v661_v62, %v665_v63  ;;  %v666_v10 = vld [vmem:[%s2358_s20 + $0x70] sm:$0xff]  ;;  %v667_v12 = vld [vmem:[%s2358_s20 + $0x78] sm:$0xff]  ;;  %v1974_v13 = vcombine.high %v655_v3, %v659_v6  ;;  %v1973_v16 = vcombine.low %v655_v3, %v659_v6  ;;  %v2175_v22 = vld [vmem:[%s2373_s30 + $0xc0] sm:$0xff]   ;;  %v670_v55 = vlaneseq }
 0x2fa   : > { %v650_v5 = vld [vmem:[#allocation2] sm:$0x3]  ;;  %796 = vmatprep.subr.bf16.mxu0 %v1976_v61  ;;  %837 = vmatprep.subr.bf16.mxu1 %v1978_v0  ;;  %v1980_v17 = vcombine.high %v662_v7, %v666_v10  ;;  %v1982_v18 = vcombine.high %v663_v11, %v667_v12  ;;  %v1979_v19 = vcombine.low %v662_v7, %v666_v10  ;;  %v2178_v25 = vld [vmem:[%s2373_s30 + $0x48] sm:$0xff]   ;;  %v2182_v29 = vld [vmem:[%s2373_s30 + $0x50] sm:$0xff]  }
 0x2fb   : > { %v651_v14 = vpack.c.bf16 %v650_v5, %v650_v5  ;;  %v1981_v20 = vcombine.low %v663_v11, %v667_v12  ;;  %v2176_v23 = vld [vmem:[%s2373_s30] sm:$0xff]   ;;  %v2179_v26 = vld [vmem:[%s2373_s30 + $0xc8] sm:$0xff]   ;;  %v2183_v30 = vld [vmem:[%s2373_s30 + $0xd0] sm:$0xff]   ;;  %v2472_v56 = vshrl.u32 %v670_v55, 7 }
 0x2fc   : > { %v2177_v24 = vld [vmem:[%s2373_s30 + $0x80] sm:$0xff]   ;;  %v2180_v27 = vld [vmem:[%s2373_s30 + $0x8] sm:$0xff]   ;;  %v2184_v31 = vld [vmem:[%s2373_s30 + $0x10] sm:$0xff]  }
 0x2fd   : > { %797 = vmatpush1.bf16.msra.mxu0 %v1975_v4  ;;  %838 = vmatpush1.bf16.msra.mxu1 %v1977_v8  ;;  %v2181_v28 = vld [vmem:[%s2373_s30 + $0x88] sm:$0xff]   ;;  %v2185_v32 = vld [vmem:[%s2373_s30 + $0x90] sm:$0xff]   ;;  %v2186_v33 = vld [vmem:[%s2373_s30 + $0x58] sm:$0xff]   ;;  %v672_v57 = vsub.s32 0, %v2472_v56  ;;  %v680_v59 = vsub.s32 2, %v2472_v56  ;;  %v676_v60 = vsub.s32 1, %v2472_v56 }
 0x2fe   : > { %876 = vmatprep.subr.bf16.mxu0 %v1972_v9  ;;  %917 = vmatprep.subr.bf16.mxu1 %v1974_v13  ;;  %v2187_v34 = vld [vmem:[%s2373_s30 + $0xd8] sm:$0xff]   ;;  %v2190_v37 = vld [vmem:[%s2373_s30 + $0x60] sm:$0xff]   ;;  %v2194_v41 = vld [vmem:[%s2373_s30 + $0x68] sm:$0xff]   ;;  %v684_v61 = vsub.s32 3, %v2472_v56 }
 0x2ff   : > { %v2188_v35 = vld [vmem:[%s2373_s30 + $0x18] sm:$0xff]   ;;  %v2191_v38 = vld [vmem:[%s2373_s30 + $0xe0] sm:$0xff]   ;;  %v2195_v42 = vld [vmem:[%s2373_s30 + $0xe8] sm:$0xff]  }
 0x300   : > { %1983 = vmatmul.mubr.msk.bf16.vlgmr.msra.gmra.mrb[0].mxu0 %vm790_vm9, %v651_v14  ;;  %1984 = vmatmul.mubr.msk.bf16.vlgmr.msra.gmra.mrb[0].mxu1 %vm790_vm9, %v651_v14  ;;  %v2189_v36 = vld [vmem:[%s2373_s30 + $0x98] sm:$0xff]   ;;  %v2192_v39 = vld [vmem:[%s2373_s30 + $0x20] sm:$0xff]   ;;  %v2196_v43 = vld [vmem:[%s2373_s30 + $0x28] sm:$0xff]  }
 0x301   : > { %877 = vmatpush1.bf16.msra.mxu0 %v1971_v15  ;;  %918 = vmatpush1.bf16.msra.mxu1 %v1973_v16  ;;  %v2193_v40 = vld [vmem:[%s2373_s30 + $0xa0] sm:$0xff]   ;;  %v2197_v44 = vld [vmem:[%s2373_s30 + $0xa8] sm:$0xff]   ;;  %v2198_v45 = vld [vmem:[%s2373_s30 + $0x70] sm:$0xff]  }
 0x302   : > { %878 = vmatprep.subr.bf16.mxu0 %v1980_v17  ;;  %919 = vmatprep.subr.bf16.mxu1 %v1982_v18  ;;  %v2199_v46 = vld [vmem:[%s2373_s30 + $0xf0] sm:$0xff]   ;;  %v2202_v49 = vld [vmem:[%s2373_s30 + $0x78] sm:$0xff]   ;;  %v2206_v53 = vld [vmem:[%s2373_s30 + $0x140] sm:$0xff]   ;;  %v688_v18 = vsub.s32 4, %v2472_v56 }
 0x303   : > { %908 = vmatprep.mubr.bf16.mxu0 %v2282_v58  ;;  %949 = vmatprep.mubr.bf16.mxu1 %v2282_v58  ;;  %v2200_v47 = vld [vmem:[%s2373_s30 + $0x30] sm:$0xff]   ;;  %v2203_v50 = vld [vmem:[%s2373_s30 + $0xf8] sm:$0xff]   ;;  %v2207_v54 = vld [vmem:[%s2373_s30 + $0x1c0] sm:$0xff]  }
 0x304   : > { %v2201_v48 = vld [vmem:[%s2373_s30 + $0xb0] sm:$0xff]   ;;  %v2204_v51 = vld [vmem:[%s2373_s30 + $0x38] sm:$0xff]   ;;  %v2476_v58 = vld [vmem:[%s2363_s23] sm:$0xff] }
 0x305   : > { %879 = vmatpush1.bf16.msra.mxu0 %v1979_v19  ;;  %920 = vmatpush1.bf16.msra.mxu1 %v1981_v20  ;;  %v2205_v52 = vld [vmem:[%s2373_s30 + $0xb8] sm:$0xff]   ;;  %v673_v62 = vrot.slane %v2476_v58, %v672_v57  ;;  %v681_v63 = vrot.slane %v2476_v58, %v680_v59  ;;  %v677_v0 = vrot.slane %v2476_v58, %v676_v60 }
 0x306   : > { %2060 = vmatprep.subr.bf16.mxu0 %v2174_v21  ;;  %2082 = vmatprep.subr.bf16.mxu1 %v2175_v22  ;;  %v685_v1 = vrot.slane %v2476_v58, %v684_v61  ;;  %v696_v21 = vsub.s32 6, %v2472_v56  ;;  %v692_v22 = vsub.s32 5, %v2472_v56 }
 0x308   : > { %1985 = vmatmul.mubr.msk.bf16.vlgmr.msra.gmra.mrb[4].mxu0 %vm790_vm9, %v651_v14  ;;  %1986 = vmatmul.mubr.msk.bf16.vlgmr.msra.gmra.mrb[4].mxu1 %vm790_vm9, %v651_v14 }
 0x309   : > { %2061 = vmatpush3.bf16.msra.mxu0 %v2176_v23  ;;  %2083 = vmatpush3.bf16.msra.mxu1 %v2177_v24 }
 0x30a   : > { %2062 = vmatprep.subr.bf16.mxu0 %v2178_v25  ;;  %2084 = vmatprep.subr.bf16.mxu1 %v2179_v26 }
 0x30d   : > { %2063 = vmatpush3.bf16.msra.mxu0 %v2180_v27  ;;  %2085 = vmatpush3.bf16.msra.mxu1 %v2181_v28  ;;  %v689_v28 = vrot.slane %v2476_v58, %v688_v18 }
 0x30e   : > { %2064 = vmatprep.subr.bf16.mxu0 %v2182_v29  ;;  %2086 = vmatprep.subr.bf16.mxu1 %v2183_v30 }
 0x311   : > { %2065 = vmatpush3.bf16.msra.mxu0 %v2184_v31  ;;  %2087 = vmatpush3.bf16.msra.mxu1 %v2185_v32 }
 0x312   : > { %2066 = vmatprep.subr.bf16.mxu0 %v2186_v33  ;;  %2088 = vmatprep.subr.bf16.mxu1 %v2187_v34  ;;  %v697_v33 = vrot.slane %v2476_v58, %v696_v21  ;;  %v693_v34 = vrot.slane %v2476_v58, %v692_v22 }
 0x315   : > { %2067 = vmatpush3.bf16.msra.mxu0 %v2188_v35  ;;  %2089 = vmatpush3.bf16.msra.mxu1 %v2189_v36 }
 0x316   : > { %2068 = vmatprep.subr.bf16.mxu0 %v2190_v37  ;;  %2090 = vmatprep.subr.bf16.mxu1 %v2191_v38 }
 0x319   : > { %2069 = vmatpush3.bf16.msra.mxu0 %v2192_v39  ;;  %2091 = vmatpush3.bf16.msra.mxu1 %v2193_v40 }
 0x31a   : > { %2070 = vmatprep.subr.bf16.mxu0 %v2194_v41  ;;  %2092 = vmatprep.subr.bf16.mxu1 %v2195_v42 }
 0x31d   : > { %2071 = vmatpush3.bf16.msra.mxu0 %v2196_v43  ;;  %2093 = vmatpush3.bf16.msra.mxu1 %v2197_v44  ;;  %v700_v44 = vsub.s32 7, %v2472_v56 }
 0x31e   : > { %2072 = vmatprep.subr.bf16.mxu0 %v2198_v45  ;;  %2094 = vmatprep.subr.bf16.mxu1 %v2199_v46 }
 0x321   : > { %2073 = vmatpush3.bf16.msra.mxu0 %v2200_v47  ;;  %2095 = vmatpush3.bf16.msra.mxu1 %v2201_v48 }
 0x322   : > { %2074 = vmatprep.subr.bf16.mxu0 %v2202_v49  ;;  %2096 = vmatprep.subr.bf16.mxu1 %v2203_v50 }
 0x325   : > { %2075 = vmatpush3.bf16.msra.mxu0 %v2204_v51  ;;  %2097 = vmatpush3.bf16.msra.mxu1 %v2205_v52 }
 0x326   : > { %2104 = vmatprep.subr.bf16.mxu0 %v2206_v53  ;;  %2126 = vmatprep.subr.bf16.mxu1 %v2207_v54  ;;  %v701_v53 = vrot.slane %v2476_v58, %v700_v44 }
 0x3d3   : > { %v828_v2 = vpop.f32.mrb[0].mxu0  ;;  %v869_v4 = vpop.f32.mrb[0].mxu1 }
 0x3d4   : > { %v2485_v3 = vadd.f32 %v828_v2, %v673_v62  ;;  %v830_v5 = vpop.f32.mrb[1].mxu0  ;;  %v2487_v6 = vadd.f32 %v869_v4, %v681_v63  ;;  %v871_v8 = vpop.f32.mrb[1].mxu1 }
 0x3d5   : > { %v2489_v7 = vadd.f32 %v830_v5, %v677_v0  ;;  %v832_v9 = vpop.f32.mrb[2].mxu0  ;;  %v2494_v11 = vadd.f32 %v871_v8, %v685_v1  ;;  %v873_v12 = vpop.f32.mrb[2].mxu1 }
 0x3d6   : > { %v2492_v10 = vmul.f32 0.70710677, %v2485_v3  ;;  %v833_v13 = vpop.f32.mrb[3].mxu0  ;;  %v2497_v14 = vmul.f32 0.70710677, %v2487_v6  ;;  %v874_v20 = vpop.f32.mrb[3].mxu1 }
 0x3d7   : > { %v2500_v15 = vmul.f32 0.70710677, %v2489_v7  ;;  %v2504_v17 = vmul.f32 0.70710677, %v2494_v11  ;;  %v2552_v9 = vmul.f32 0.5, %v2485_v3  ;;  %v2556_v18 = vmul.f32 0.5, %v2487_v6 }
 0x3d8   : > { %v982_v16 = vand.u32 2147483647, %v2492_v10  ;;  %v984_v19 = vand.u32 2147483647, %v2497_v14  ;;  %vm966_vm10 = vcmp.ge.f32.partialorder %v2492_v10, 0.0  ;;  %vm968_vm11 = vcmp.ge.f32.partialorder %v2497_v14, 0.0 }
 0x3d9   : > { %v983_v25 = vand.u32 2147483647, %v2500_v15  ;;  %v985_v27 = vand.u32 2147483647, %v2504_v17  ;;  %vm967_vm12 = vcmp.ge.f32.partialorder %v2500_v15, 0.0  ;;  %vm969_vm13 = vcmp.ge.f32.partialorder %v2504_v17, 0.0 }
 0x3da   : > { %v990_v23 = vmul.f32 0.3275911, %v982_v16  ;;  %v992_v24 = vmul.f32 0.3275911, %v984_v19  ;;  %v1094_v51 = vsub.f32 0.0, %v982_v16  ;;  %v1096_v54 = vsub.f32 0.0, %v984_v19 }
 0x3db   : > { %v910_v29 = vpop.f32.mrb[4].mxu0  ;;  %v951_v30 = vpop.f32.mrb[4].mxu1  ;;  %v991_v32 = vmul.f32 0.3275911, %v983_v25  ;;  %v993_v37 = vmul.f32 0.3275911, %v985_v27 }
 0x3dc   : > { %v998_v26 = vadd.f32 1.0, %v990_v23  ;;  %v1000_v31 = vadd.f32 1.0, %v992_v24  ;;  %v912_v35 = vpop.f32.mrb[5].mxu0  ;;  %v953_v36 = vpop.f32.mrb[5].mxu1  ;;  %v2515_v43 = vadd.f32 %v910_v29, %v689_v28  ;;  %v2518_v46 = vadd.f32 %v951_v30, %v697_v33 }
 0x3dd   : > { %v914_v38 = vpop.f32.mrb[6].mxu0  ;;  %v999_v39 = vadd.f32 1.0, %v991_v32  ;;  %v955_v41 = vpop.f32.mrb[6].mxu1  ;;  %v1001_v42 = vadd.f32 1.0, %v993_v37  ;;  %v2520_v47 = vadd.f32 %v912_v35, %v693_v34  ;;  %v1095_v56 = vsub.f32 0.0, %v983_v25 }
 0x3de   : > { %2238 = vrcp.f32 %v998_v26  ;;  %v915_v40 = vpop.f32.mrb[7].mxu0  ;;  %v956_v45 = vpop.f32.mrb[7].mxu1  ;;  %v2523_v48 = vmul.f32 0.70710677, %v2515_v43  ;;  %v2526_v49 = vmul.f32 0.70710677, %v2518_v46  ;;  %v1102_v62 = vmul.f32 %v1094_v51, %v982_v16 }
 0x3df   : > { %2240 = vrcp.f32 %v1000_v31  ;;  %v2529_v50 = vmul.f32 0.70710677, %v2520_v47  ;;  %v1097_v63 = vsub.f32 0.0, %v985_v27  ;;  %v2545_v1 = vadd.f32 %v953_v36, %v701_v53 }
 0x3e0   : > { %2242 = vrcp.f32 %v999_v39  ;;  %v2532_v52 = vand.u32 2147483647, %v2523_v48  ;;  %v2536_v55 = vand.u32 2147483647, %v2526_v49  ;;  %v1104_v4 = vmul.f32 %v1096_v54, %v984_v19 }
 0x3e1   : > { %2244 = vrcp.f32 %v1001_v42  ;;  %v2541_v60 = vand.u32 2147483647, %v2529_v50  ;;  %v1103_v13 = vmul.f32 %v1095_v56, %v983_v25  ;;  %v1110_v22 = vmul.f32 1.442695, %v1102_v62 }
 0x3e2   : > { %v994_v57 = vmul.f32 0.3275911, %v2532_v52  ;;  %v996_v59 = vmul.f32 0.3275911, %v2536_v55  ;;  %v1105_v23 = vmul.f32 %v1097_v63, %v985_v27  ;;  %v2561_v24 = vmul.f32 0.70710677, %v2545_v1 }
 0x3e3   : > { %v995_v8 = vmul.f32 0.3275911, %v2541_v60  ;;  %v1114_v26 = vmul.f32 1.442695, %v1104_v4  ;;  %v2566_v28 = vmul.f32 0.5, %v2489_v7  ;;  %v2283_v38 = vmov -1.0  }
 0x3e4   : > { %v1002_v0 = vadd.f32 1.0, %v994_v57  ;;  %v1004_v5 = vadd.f32 1.0, %v996_v59  ;;  %v1112_v30 = vmul.f32 1.442695, %v1103_v13  ;;  %v1116_v34 = vmul.f32 1.442695, %v1105_v23 }
 0x3e5   : > { %v1003_v20 = vadd.f32 1.0, %v995_v8  ;;  %v2574_v35 = vand.u32 2147483647, %v2561_v24  ;;  %v974_v39 = vsel %vm966_vm10, 1.0, %v2283_v38  ;;  %v1099_v41 = vsub.f32 0.0, %v2541_v60 }
 0x3e6   : > { %2246 = vrcp.f32 %v1002_v0  ;;  %vm971_vm14 = vcmp.ge.f32.partialorder %v2529_v50, 0.0  ;;  %vm973_vm15 = vcmp.ge.f32.partialorder %v2561_v24, 0.0  ;;  %v2221_v24 = vld [vmem:[%s2373_s30 + $0x198] sm:$0xff]   ;;  %vm970_vm0 = vcmp.ge.f32.partialorder %v2523_v48, 0.0 }
 0x3e7   : > { %2248 = vrcp.f32 %v1004_v5  ;;  %v997_v42 = vmul.f32 0.3275911, %v2574_v35  ;;  %v1107_v4 = vmul.f32 %v1099_v41, %v2541_v60  ;;  %vm972_vm1 = vcmp.ge.f32.partialorder %v2526_v49, 0.0  ;;  %v2229_v49 = vld [vmem:[%s2373_s30 + $0x1a8] sm:$0xff]  }
 0x3e8   : > { %v2543_v61 = vpop.eup %2238  ;;  %2250 = vrcp.f32 %v1003_v20  ;;  %v976_v20 = vsel %vm968_vm11, 1.0, %v2283_v38  ;;  %v978_v48 = vsel %vm970_vm0, 1.0, %v2283_v38 }
 0x3e9   : > { %v2547_v58 = vpop.eup %2240  ;;  %v1022_v2 = vmul.f32 1.0614054, %v2543_v61  ;;  %2252 = vpow2.f32 %v1110_v22  ;;  %v1005_v56 = vadd.f32 1.0, %v997_v42  ;;  %v1120_v14 = vmul.f32 1.442695, %v1107_v4 }
 0x3ea   : > { %v1024_v12 = vmul.f32 1.0614054, %v2547_v58  ;;  %v2558_v21 = vpop.eup %2242  ;;  %2254 = vpow2.f32 %v1114_v26 }
 0x3eb   : > { %v1030_v16 = vadd.f32 -1.4531521, %v1022_v2  ;;  %v1023_v25 = vmul.f32 1.0614054, %v2558_v21  ;;  %v2568_v6 = vpop.eup %2244  ;;  %2256 = vpow2.f32 %v1112_v30 }
 0x3ec   : > { %v1032_v19 = vadd.f32 -1.4531521, %v1024_v12  ;;  %v1025_v32 = vmul.f32 1.0614054, %v2568_v6  ;;  %2258 = vpow2.f32 %v1116_v34 }
 0x3ed   : > { %v1038_v3 = vmul.f32 %v2543_v61, %v1030_v16  ;;  %v1031_v31 = vadd.f32 -1.4531521, %v1023_v25  ;;  %2260 = vrcp.f32 %v1005_v56 }
 0x3ee   : > { %v1040_v29 = vmul.f32 %v2547_v58, %v1032_v19  ;;  %v1033_v37 = vadd.f32 -1.4531521, %v1025_v32  ;;  %2262 = vpow2.f32 %v1120_v14 }
 0x3ef   : > { %v1046_v27 = vadd.f32 1.4214138, %v1038_v3  ;;  %v1039_v36 = vmul.f32 %v2558_v21, %v1031_v31 }
 0x3f0   : > { %v1048_v33 = vadd.f32 1.4214138, %v1040_v29  ;;  %v1041_v51 = vmul.f32 %v2568_v6, %v1033_v37  ;;  %v2585_v53 = vpop.eup %2246 }
 0x3f1   : > { %v1054_v7 = vmul.f32 %v2543_v61, %v1046_v27  ;;  %v1047_v45 = vadd.f32 1.4214138, %v1039_v36  ;;  %v2588_v10 = vpop.eup %2248  ;;  %v1026_v63 = vmul.f32 1.0614054, %v2585_v53 }
 0x3f2   : > { %v1056_v40 = vmul.f32 %v2547_v58, %v1048_v33  ;;  %v1049_v62 = vadd.f32 1.4214138, %v1041_v51  ;;  %v1028_v2 = vmul.f32 1.0614054, %v2588_v10  ;;  %v2597_v16 = vpop.eup %2250 }
 0x3f3   : > { %v1062_v44 = vadd.f32 -0.28449672, %v1054_v7  ;;  %v1055_v59 = vmul.f32 %v2558_v21, %v1047_v45  ;;  %v1034_v13 = vadd.f32 -1.4531521, %v1026_v63  ;;  %v2253_v26 = vpop.eup %2252  ;;  %v1027_v30 = vmul.f32 1.0614054, %v2597_v16 }
 0x3f4   : > { %v1064_v54 = vadd.f32 -0.28449672, %v1056_v40  ;;  %v1057_v12 = vmul.f32 %v2568_v6, %v1049_v62  ;;  %v1036_v19 = vadd.f32 -1.4531521, %v1028_v2  ;;  %v2255_v27 = vpop.eup %2254  ;;  %v1098_v7 = vsub.f32 0.0, %v2532_v52 }
 0x3f5   : > { %v1070_v57 = vmul.f32 %v2543_v61, %v1062_v44  ;;  %v1063_v8 = vadd.f32 -0.28449672, %v1055_v59  ;;  %v1042_v29 = vmul.f32 %v2585_v53, %v1034_v13  ;;  %v1035_v37 = vadd.f32 -1.4531521, %v1027_v30  ;;  %v2257_v40 = vpop.eup %2256 }
 0x3f6   : > { %v1072_v0 = vmul.f32 %v2547_v58, %v1064_v54  ;;  %v1065_v3 = vadd.f32 -0.28449672, %v1057_v12  ;;  %v1044_v36 = vmul.f32 %v2588_v10, %v1036_v19  ;;  %v1100_v44 = vsub.f32 0.0, %v2536_v55  ;;  %v2259_v45 = vpop.eup %2258 }
 0x3f7   : > { %v1078_v5 = vadd.f32 0.2548296, %v1070_v57  ;;  %v1071_v60 = vmul.f32 %v2558_v21, %v1063_v8  ;;  %v1050_v54 = vadd.f32 1.4214138, %v1042_v29  ;;  %v1043_v56 = vmul.f32 %v2597_v16, %v1035_v37 }
 0x3f8   : > { %v1080_v22 = vadd.f32 0.2548296, %v1072_v0  ;;  %v1073_v33 = vmul.f32 %v2568_v6, %v1065_v3  ;;  %v2618_v0 = vpop.eup %2260  ;;  %v1052_v4 = vadd.f32 1.4214138, %v1044_v36  ;;  %v977_v12 = vsel %vm969_vm13, 1.0, %v2283_v38 }
 0x3f9   : > { %v1086_v23 = vmul.f32 %v2543_v61, %v1078_v5  ;;  %v1079_v32 = vadd.f32 0.2548296, %v1071_v60  ;;  %v1101_v61 = vsub.f32 0.0, %v2574_v35  ;;  %v1051_v5 = vadd.f32 1.4214138, %v1043_v56 }
 0x3fa   : > { %v1088_v25 = vmul.f32 %v2547_v58, %v1080_v22  ;;  %v1081_v42 = vadd.f32 0.2548296, %v1073_v33  ;;  %v1106_v13 = vmul.f32 %v1098_v7, %v2532_v52  ;;  %v1153_v52 = vmul.f32 0.5, %v2494_v11  ;;  %v2263_v7 = vpop.eup %2262 }
 0x3fb   : > { %v1126_v31 = vmul.f32 %v2253_v26, %v1086_v23  ;;  %v1087_v41 = vmul.f32 %v2558_v21, %v1079_v32  ;;  %v1109_v63 = vmul.f32 %v1101_v61, %v2574_v35  ;;  %v975_v21 = vsel %vm967_vm12, 1.0, %v2283_v38 }
 0x3fc   : > { %v1128_v34 = vmul.f32 %v2255_v27, %v1088_v25  ;;  %v1089_v62 = vmul.f32 %v2568_v6, %v1081_v42  ;;  %v1058_v35 = vmul.f32 %v2585_v53, %v1050_v54  ;;  %v1059_v22 = vmul.f32 %v2597_v16, %v1051_v5  ;;  %v2209_v54 = vld [vmem:[%s2373_s30 + $0x180] sm:$0xff]   ;;  %v2214_v5 = vld [vmem:[%s2373_s30 + $0x150] sm:$0xff]  }
 0x3fd   : > { %v1134_v58 = vsub.f32 1.0, %v1126_v31  ;;  %v1127_v59 = vmul.f32 %v2257_v40, %v1087_v41  ;;  %v1108_v23 = vmul.f32 %v1100_v44, %v2536_v55  ;;  %v1124_v60 = vmul.f32 1.442695, %v1109_v63  ;;  %v2208_v41 = vld [vmem:[%s2373_s30 + $0x100] sm:$0xff]   ;;  %v2211_v63 = vld [vmem:[%s2373_s30 + $0x1c8] sm:$0xff]  }
 0x3fe   : > { %v1136_v51 = vsub.f32 1.0, %v1128_v34  ;;  %v1060_v26 = vmul.f32 %v2588_v10, %v1052_v4  ;;  %v1067_v17 = vadd.f32 -0.28449672, %v1059_v22  ;;  %v1118_v30 = vmul.f32 1.442695, %v1106_v13 }
 0x3ff   : > { %v1142_v57 = vmul.f32 %v1134_v58, %v974_v39  ;;  %v1135_v8 = vsub.f32 1.0, %v1127_v59  ;;  %v1129_v39 = vmul.f32 %v2259_v45, %v1089_v62  ;;  %v1066_v31 = vadd.f32 -0.28449672, %v1058_v35  ;;  %v2215_v35 = vld [vmem:[%s2373_s30 + $0x1d0] sm:$0xff]  }
 0x400   : > { %v1144_v2 = vmul.f32 %v1136_v51, %v976_v20  ;;  %v1029_v20 = vmul.f32 1.0614054, %v2618_v0  ;;  %v1075_v32 = vmul.f32 %v2597_v16, %v1067_v17  ;;  %v1122_v55 = vmul.f32 1.442695, %v1108_v23  ;;  %v2210_v51 = vld [vmem:[%s2373_s30 + $0x148] sm:$0xff]  }
 0x401   : > { %v1158_v6 = vadd.f32 1.0, %v1142_v57  ;;  %v1143_v19 = vmul.f32 %v1135_v8, %v975_v21  ;;  %v1137_v15 = vsub.f32 1.0, %v1129_v39  ;;  %2264 = vpow2.f32 %v1124_v60  ;;  %v2218_v60 = vld [vmem:[%s2373_s30 + $0x158] sm:$0xff]  }
 0x402   : > { %v1160_v3 = vadd.f32 1.0, %v1144_v2  ;;  %v1037_v25 = vadd.f32 -1.4531521, %v1029_v20  ;;  %v1068_v11 = vadd.f32 -0.28449672, %v1060_v26  ;;  %2266 = vpow2.f32 %v1118_v30  ;;  %v2216_v20 = vld [vmem:[%s2373_s30 + $0x110] sm:$0xff]  }
 0x403   : > { %v1145_v29 = vmul.f32 %v1137_v15, %v977_v12  ;;  %v1159_v14 = vadd.f32 1.0, %v1143_v19  ;;  %v1166_v27 = vmul.f32 %v1158_v6, %v2552_v9  ;;  %v1083_v37 = vadd.f32 0.2548296, %v1075_v32  ;;  %v2213_v12 = vld [vmem:[%s2373_s30 + $0x188] sm:$0xff]   ;;  %v2217_v26 = vld [vmem:[%s2373_s30 + $0x190] sm:$0xff]  }
 0x404   : > { %v1045_v33 = vmul.f32 %v2618_v0, %v1037_v25  ;;  %v1168_v36 = vmul.f32 %v1160_v3, %v2556_v18  ;;  %v1074_v44 = vmul.f32 %v2585_v53, %v1066_v31  ;;  %2268 = vpow2.f32 %v1122_v55  ;;  %v2224_v55 = vld [vmem:[%s2373_s30 + $0x120] sm:$0xff]  }
 0x405   : > { %v1167_v61 = vmul.f32 %v1159_v14, %v2566_v28  ;;  %v1161_v34 = vadd.f32 1.0, %v1145_v29  ;;  %v1174_v42 = vpack.c.bf16 %v1166_v27, %v1166_v27  ;;  %v1091_v45 = vmul.f32 %v2597_v16, %v1083_v37  ;;  %v2212_v16 = vld [vmem:[%s2373_s30 + $0x108] sm:$0xff]   ;;  %v2222_v27 = vld [vmem:[%s2373_s30 + $0x160] sm:$0xff]  }
 0x406   : > { %v1053_v40 = vadd.f32 1.4214138, %v1045_v33  ;;  %v1176_v56 = vpack.c.bf16 %v1168_v36, %v1168_v36  ;;  %v1076_v57 = vmul.f32 %v2588_v10, %v1068_v11  ;;  %v1082_v2 = vadd.f32 0.2548296, %v1074_v44  ;;  %v2223_v33 = vld [vmem:[%s2373_s30 + $0x1e0] sm:$0xff]   ;;  %v2226_v36 = vld [vmem:[%s2373_s30 + $0x168] sm:$0xff]  }
 0x407   : > { %v1175_v9 = vpack.c.bf16 %v1167_v61, %v1167_v61  ;;  %v1169_v58 = vmul.f32 %v1161_v34, %v1153_v52  ;;  %v1131_v59 = vmul.f32 %v2263_v7, %v1091_v45  ;;  %v979_v8 = vsel %vm971_vm14, 1.0, %v2283_v38  ;;  %v2225_v11 = vld [vmem:[%s2373_s30 + $0x1a0] sm:$0xff]  }
 0x408   : > { %v1061_v28 = vmul.f32 %v2618_v0, %v1053_v40  ;;  %v1084_v39 = vadd.f32 0.2548296, %v1076_v57  ;;  %v1090_v19 = vmul.f32 %v2585_v53, %v1082_v2  ;;  %v1155_v15 = vmul.f32 0.5, %v2520_v47  ;;  %v2219_v53 = vld [vmem:[%s2373_s30 + $0x1d8] sm:$0xff]  }
 0x409   : > { %1733 = vmatprep.mubr.bf16.mxu0 %v1175_v9  ;;  %v1177_v18 = vpack.c.bf16 %v1169_v58, %v1169_v58  ;;  %v1139_v21 = vsub.f32 1.0, %v1131_v59  ;;  %v1157_v34 = vmul.f32 0.5, %v2545_v1  ;;  %v2227_v9 = vld [vmem:[%s2373_s30 + $0x1e8] sm:$0xff]   ;;  %v980_v44 = vsel %vm972_vm1, 1.0, %v2283_v38  ;;  %v2237_v2 = vld [vmem:[%s2373_s30 + $0x1b8] sm:$0xff]  }
 0x40a   : > { %v1069_v62 = vadd.f32 -0.28449672, %v1061_v28  ;;  %1734 = vmatmul.mubr.bf16.vlgmr.msra.gmra.mrb[8].mxu0 %v1174_v42  ;;  %v1092_v17 = vmul.f32 %v2588_v10, %v1084_v39  ;;  %v981_v10 = vsel %vm973_vm15, 1.0, %v2283_v38  ;;  %v2228_v58 = vld [vmem:[%s2373_s30 + $0x128] sm:$0xff]   ;;  %v2230_v42 = vld [vmem:[%s2373_s30 + $0x170] sm:$0xff]   ;;  %v1154_v57 = vmul.f32 0.5, %v2515_v43 }
 0x40b   : > { %1773 = vmatprep.mubr.bf16.mxu1 %v1177_v18  ;;  %2105 = vmatpush3.bf16.msra.mxu0 %v2208_v41  ;;  %v1147_v13 = vmul.f32 %v1139_v21, %v979_v8  ;;  %v2265_v22 = vpop.eup %2264  ;;  %v2231_v28 = vld [vmem:[%s2373_s30 + $0x1f0] sm:$0xff]   ;;  %v2235_v38 = vld [vmem:[%s2373_s30 + $0x1f8] sm:$0xff]   ;;  %v1987_v8 = vld [vmem:[%s404_s27] ss:$0 sm:$0xff] }
 0x40c   : > { %v1077_v4 = vmul.f32 %v2618_v0, %v1069_v62  ;;  %1774 = vmatmul.mubr.bf16.vlgmr.msra.gmra.mrb[8].mxu1 %v1176_v56  ;;  %2106 = vmatprep.subr.bf16.mxu0 %v2210_v51  ;;  %v2267_v3 = vpop.eup %2266  ;;  %v2232_v51 = vld [vmem:[%s2373_s30 + $0x130] sm:$0xff]   ;;  %v2236_v62 = vld [vmem:[%s2373_s30 + $0x138] sm:$0xff]  }
 0x40d   : > { %2127 = vmatpush3.bf16.msra.mxu1 %v2209_v54  ;;  %v1163_v23 = vadd.f32 1.0, %v1147_v13  ;;  %v1130_v52 = vmul.f32 %v2267_v3, %v1090_v19  ;;  %v2234_v54 = vld [vmem:[%s2373_s30 + $0x178] sm:$0xff]   ;;  %v2233_v56 = vld [vmem:[%s2373_s30 + $0x1b0] sm:$0xff]  }
 0x40e   : > { %v1085_v6 = vadd.f32 0.2548296, %v1077_v4  ;;  %2128 = vmatprep.subr.bf16.mxu1 %v2211_v63  ;;  %v2269_v47 = vpop.eup %2268 }
 0x40f   : > { %2107 = vmatpush3.bf16.msra.mxu0 %v2212_v16  ;;  %v1171_v29 = vmul.f32 %v1163_v23, %v1155_v15  ;;  %v1132_v31 = vmul.f32 %v2269_v47, %v1092_v17  ;;  %v1138_v61 = vsub.f32 1.0, %v1130_v52  ;;  %v1156_v16 = vmul.f32 0.5, %v2518_v46 }
 0x410   : > { %v1093_v50 = vmul.f32 %v2618_v0, %v1085_v6  ;;  %2108 = vmatprep.subr.bf16.mxu0 %v2214_v5  ;;  %v2220_v0 = vld [vmem:[%s2373_s30 + $0x118] sm:$0xff]  }
 0x411   : > { %2129 = vmatpush3.bf16.msra.mxu1 %v2213_v12  ;;  %v1179_v14 = vpack.c.bf16 %v1171_v29, %v1171_v29  ;;  %v1140_v37 = vsub.f32 1.0, %v1132_v31  ;;  %v1146_v1 = vmul.f32 %v1138_v61, %v978_v48 }
 0x412   : > { %v1133_v25 = vmul.f32 %v2265_v22, %v1093_v50  ;;  %2130 = vmatprep.subr.bf16.mxu1 %v2215_v35 }
 0x413   : > { %2109 = vmatpush3.bf16.msra.mxu0 %v2216_v20  ;;  %1813 = vmatprep.mubr.bf16.mxu0 %v1179_v14  ;;  %v1148_v45 = vmul.f32 %v1140_v37, %v980_v44  ;;  %v1162_v18 = vadd.f32 1.0, %v1146_v1 }
 0x414   : > { %v1141_v30 = vsub.f32 1.0, %v1133_v25  ;;  %2110 = vmatprep.subr.bf16.mxu0 %v2218_v60 }
 0x415   : > { %2131 = vmatpush3.bf16.msra.mxu1 %v2217_v26  ;;  %v1164_v59 = vadd.f32 1.0, %v1148_v45  ;;  %v1170_v63 = vmul.f32 %v1162_v18, %v1154_v57 }
 0x416   : > { %v1149_v32 = vmul.f32 %v1141_v30, %v981_v10  ;;  %2132 = vmatprep.subr.bf16.mxu1 %v2219_v53 }
 0x417   : > { %2111 = vmatpush3.bf16.msra.mxu0 %v2220_v0  ;;  %v1172_v21 = vmul.f32 %v1164_v59, %v1156_v16  ;;  %v1178_v4 = vpack.c.bf16 %v1170_v63, %v1170_v63 }
 0x418   : > { %v1165_v7 = vadd.f32 1.0, %v1149_v32  ;;  %2112 = vmatprep.subr.bf16.mxu0 %v2222_v27 }
 0x419   : > { %2133 = vmatpush3.bf16.msra.mxu1 %v2221_v24  ;;  %v1180_v5 = vpack.c.bf16 %v1172_v21, %v1172_v21 }
 0x41a   : > { %v1173_v40 = vmul.f32 %v1165_v7, %v1157_v34  ;;  %2134 = vmatprep.subr.bf16.mxu1 %v2223_v33 }
 0x41b   : > { %2113 = vmatpush3.bf16.msra.mxu0 %v2224_v55 }
 0x41c   : > { %v1181_v41 = vpack.c.bf16 %v1173_v40, %v1173_v40  ;;  %2114 = vmatprep.subr.bf16.mxu0 %v2226_v36 }
 0x41d   : > { %2135 = vmatpush3.bf16.msra.mxu1 %v2225_v11 }
 0x41e   : > { %1853 = vmatprep.mubr.bf16.mxu1 %v1181_v41  ;;  %2136 = vmatprep.subr.bf16.mxu1 %v2227_v9 }
 0x41f   : > { %2115 = vmatpush3.bf16.msra.mxu0 %v2228_v58 }
 0x420   : > { %2116 = vmatprep.subr.bf16.mxu0 %v2230_v42 }
 0x421   : > { %2137 = vmatpush3.bf16.msra.mxu1 %v2229_v49 }
 0x422   : > { %2138 = vmatprep.subr.bf16.mxu1 %v2231_v28 }
 0x423   : > { %2117 = vmatpush3.bf16.msra.mxu0 %v2232_v51 }
 0x424   : > { %2118 = vmatprep.subr.bf16.mxu0 %v2234_v54 }
 0x425   : > { %2139 = vmatpush3.bf16.msra.mxu1 %v2233_v56 }
 0x426   : > { %2140 = vmatprep.subr.bf16.mxu1 %v2235_v38 }
 0x427   : > { %2119 = vmatpush3.bf16.msra.mxu0 %v2236_v62 }
 0x429   : > { %2141 = vmatpush3.bf16.msra.mxu1 %v2237_v2 }
 0x42a   : > { %1814 = vmatmul.mubr.bf16.vlgmr.msra.gmra.mrb[12].mxu0 %v1178_v4 }
 0x42c   : > { %1854 = vmatmul.mubr.bf16.vlgmr.msra.gmra.mrb[12].mxu1 %v1180_v5 }
 0x4dd   : > { %v2076_v43 = vpop.f32.mrb[8].mxu0 }
 0x4de   : > { %v2077_v12 = vpop.f32.mrb[9].mxu0 }
 0x4df   : > { %v2098_v39 = vpop.f32.mrb[8].mxu1  ;;  %v2078_v46 = vadd.f32 %v2077_v12, %v2076_v43  ;;  %v2079_v13 = vpop.f32.mrb[10].mxu0 }
 0x4e0   : > { %v2099_v6 = vpop.f32.mrb[9].mxu1  ;;  %v2080_v35 = vpop.f32.mrb[11].mxu0 }
 0x4e1   : > { %v1736_v22 = vadd.f32 %v2078_v46, %v1987_v8  ;;  %v2100_v20 = vadd.f32 %v2099_v6, %v2098_v39  ;;  %v2101_v19 = vpop.f32.mrb[10].mxu1 }
 0x4e2   : > { %v2102_v15 = vpop.f32.mrb[11].mxu1 }
 0x4e3   : > { %v1776_v50 = vadd.f32 %v2100_v20, %v1736_v22 }
 0x4fd   : > { %v2120_v23 = vpop.f32.mrb[12].mxu0 }
 0x4fe   : > { %v2121_v60 = vpop.f32.mrb[13].mxu0 }
 0x4ff   : > { %v2142_v3 = vpop.f32.mrb[12].mxu1  ;;  %v2122_v26 = vadd.f32 %v2121_v60, %v2120_v23  ;;  %v2123_v17 = vpop.f32.mrb[14].mxu0 }
 0x500   : > { %v2143_v25 = vpop.f32.mrb[13].mxu1  ;;  %v2124_v29 = vpop.f32.mrb[15].mxu0 }
 0x501   : > { %v1816_v53 = vadd.f32 %v2122_v26, %v1776_v50  ;;  %v2144_v47 = vadd.f32 %v2143_v25, %v2142_v3  ;;  %v2145_v0 = vpop.f32.mrb[14].mxu1 }
 0x502   : > { %v2146_v52 = vpop.f32.mrb[15].mxu1 }
 0x503   : > { %v1856_v30 = vadd.f32 %v2144_v47, %v1816_v53 }
 0x505   : > { %1862 = vst.msk [vmem:[%s2379_s16] sm:$0x3] %vm1861_vm2, %v1856_v30 }
 0x506 PF: > { %s20_s13 = sadd.s32 1, %s2276_s13  }
 0x507   : > { %p17_p6 = scmp.ge.s32.totalorder %s20_s13, 4  }
 0x509   :  { %19 = sbr.rel (!%p17_p6) target bundleno = 1 (0x1), region = 107 }

</bundles_post_ra>
